<compile_context>
chip_gen: v7x
topology: tpu7x:2x2x1
jax: 0.10.0
libtpu: 0.0.40
codegen_flags: <defaults>
</compile_context>

<pallas_src>
import jax
import jax.numpy as jnp
from jax.experimental import pallas as pl
from jax.experimental.pallas import tpu as pltpu

_LANES = 128
_MIN_GRID_STEPS = 4  # enough to overlap in/out DMA; >=2 steps per core on v7x


def _sublane_multiple(dtype) -> int:
    # Dtype-aware sublane tile minimum: f32 -> 8, bf16/f16 -> 16, int8/fp8 -> 32.
    itemsize = jnp.dtype(dtype).itemsize
    return max(8, 32 // max(itemsize, 1))


def _device_defaults():
    """Per-generation tuning: (block_bytes per buffer, vmem_limit_bytes|None, core_parallel)."""
    try:
        kind = jax.devices()[0].device_kind.lower()
    except Exception:
        kind = ""
    if "v7" in kind:
        # v7x: 3.2 TB/s HBM, 2 TensorCores, 64 MiB VMEM (32 MiB scoped default).
        # 6 MiB blocks -> 24 MiB double-buffered in+out; explicit vmem limit for headroom.
        return 6 * 1024 * 1024, 32 * 1024 * 1024, True
    if "v5 lite" in kind or "v5e" in kind or "v5lite" in kind:
        # v5e: 16 MiB scoped-VMEM default -> keep 2 MiB blocks (8 MiB total buffers).
        return 2 * 1024 * 1024, None, False
    # v6e / unknown: 2 MiB blocks already sit near the HBM roofline; default VMEM limit.
    return 2 * 1024 * 1024, None, False


def _snake_kernel(s_ref, x_ref, o_ref):
    # s_ref: (2,) f32 in SMEM = [a, 1/a]. Compute in f32 (safe for sub-f32 inputs);
    # the sin^2 form avoids the cancellation of -b*cos(2ax)+b when |a| is small.
    a = s_ref[0]
    inv_a = s_ref[1]
    x = x_ref[...].astype(jnp.float32)
    s = jnp.sin(a * x)
    o_ref[...] = (x + inv_a * (s * s)).astype(o_ref.dtype)


def _snake_bulk(scalars, x2d, *, donate_input=False):
    """Run the Pallas kernel on a lane-dense (rows, 128) slab."""
    rows = x2d.shape[0]
    dtype = x2d.dtype
    itemsize = jnp.dtype(dtype).itemsize
    sublane = _sublane_multiple(dtype)
    block_bytes, vmem_limit, core_parallel = _device_defaults()

    # Biggest sublane-aligned block that (a) fits the per-generation byte budget and
    # (b) still leaves ~_MIN_GRID_STEPS grid steps for pipelining / core split.
    block_rows = block_bytes // (_LANES * itemsize)
    block_rows = min(block_rows, pl.cdiv(rows, _MIN_GRID_STEPS))
    block_rows = max(sublane, (block_rows // sublane) * sublane)
    block_rows = min(block_rows, pl.cdiv(rows, sublane) * sublane)
    grid = (pl.cdiv(rows, block_rows),)

    cp_kwargs = dict(
        dimension_semantics=(pltpu.CORE_PARALLEL if core_parallel else "parallel",)
    )
    if vmem_limit is not None:
        cp_kwargs["vmem_limit_bytes"] = vmem_limit

    # Note: when rows % block_rows != 0 the masked ragged tail block computes sin on
    # padding rows before the writes are discarded -- numerically harmless.
    return pl.pallas_call(
        _snake_kernel,
        out_shape=jax.ShapeDtypeStruct((rows, _LANES), dtype),
        grid_spec=pltpu.PrefetchScalarGridSpec(
            num_scalar_prefetch=0,
            grid=grid,
            in_specs=[
                pl.BlockSpec(memory_space=pltpu.MemorySpace.SMEM),      # [a, 1/a]
                pl.BlockSpec((block_rows, _LANES), lambda i: (i, 0)),   # x tile
            ],
            out_specs=pl.BlockSpec((block_rows, _LANES), lambda i: (i, 0)),
        ),
        compiler_params=pltpu.CompilerParams(**cp_kwargs),
        input_output_aliases=({1: 0} if donate_input else {}),
    )(scalars, x2d)


def snake(x: jnp.ndarray, a=1.0, *, donate_input: bool = False) -> jnp.ndarray:
    """Snake(x) = x + (1/a)*sin(a*x)^2, applied elementwise to any-shaped x.

    `a` may be a Python float (module-constructor semantics, enables the a==0
    identity shortcut) or a traced JAX scalar (no recompile per value).
    Set donate_input=True only if the caller donates x's buffer.
    """
    orig_shape = x.shape
    orig_dtype = x.dtype
    n = int(x.size)
    if n == 0:
        return x

    a_is_static = isinstance(a, (int, float))
    if a_is_static and float(a) == 0.0:
        return x  # identity, as in the PyTorch module; no HBM round-trip
    # TODO(synk): a *traced* `a` that equals 0 cannot take the identity branch (the
    # PyTorch module takes a static float, so this matches the spec).

    if a_is_static:
        scalars = jnp.array([float(a), 1.0 / float(a)], dtype=jnp.float32)
    else:
        a_f = jnp.asarray(a, dtype=jnp.float32).reshape(())
        scalars = jnp.stack([a_f, 1.0 / a_f])

    x_flat = jnp.reshape(x, (-1,))
    rem = n % _LANES
    n_bulk = n - rem

    bulk_out = None
    if n_bulk:
        rows = n_bulk // _LANES
        bulk = x_flat if rem == 0 else x_flat[:n_bulk]
        x2d = jnp.reshape(bulk, (rows, _LANES))
        out2d = _snake_bulk(scalars, x2d, donate_input=donate_input and rem == 0)
        bulk_out = jnp.reshape(out2d, (n_bulk,))

    if rem:
        # <=127 leftover elements: plain jnp (cheaper than padding/slicing the
        # whole tensor, which doubled HBM traffic on ragged shapes).
        tail = x_flat[n_bulk:].astype(jnp.float32)
        s = jnp.sin(scalars[0] * tail)
        tail_out = (tail + scalars[1] * (s * s)).astype(orig_dtype)
        out_flat = tail_out if bulk_out is None else jnp.concatenate([bulk_out, tail_out])
    else:
        out_flat = bulk_out

    return jnp.reshape(out_flat, orig_shape)


if __name__ == "__main__":
    a = 1.0
    b = 1.0 / (2.0 * a)

    # Main NCHW test (conv-style usage, matches the PyTorch module).
    x = jax.random.normal(jax.random.PRNGKey(0), (2, 4, 16, 16), dtype=jnp.float32)
    out = jax.block_until_ready(snake(x, a=a))
    ref = x - b * jnp.cos(2.0 * a * x) + b
    assert out.shape == x.shape and out.dtype == x.dtype
    assert jnp.allclose(out, ref, atol=1e-5, rtol=1e-5)

    # Ragged element count (3*5*7*11 = 1155 = 9*128 + 3): bulk through Pallas,
    # 3-element tail via jnp, no whole-array pad/slice copies.
    x2 = jax.random.normal(jax.random.PRNGKey(1), (3, 5, 7, 11), dtype=jnp.float32)
    out2 = jax.block_until_ready(snake(x2, a=a))
    ref2 = x2 - b * jnp.cos(2.0 * a * x2) + b
    assert out2.shape == x2.shape
    assert jnp.allclose(out2, ref2, atol=1e-5, rtol=1e-5)

    # A different `a` reuses the same compiled kernel (a lives in SMEM, not the closure).
    a3 = 0.5
    b3 = 1.0 / (2.0 * a3)
    out3 = jax.block_until_ready(snake(x, a=a3))
    ref3 = x - b3 * jnp.cos(2.0 * a3 * x) + b3
    assert jnp.allclose(out3, ref3, atol=1e-5, rtol=1e-5)

    # bf16 input: streamed in bf16, computed in f32 inside the kernel, cast back.
    xb = x.astype(jnp.bfloat16)
    outb = jax.block_until_ready(snake(xb, a=a))
    xb32 = xb.astype(jnp.float32)
    refb = (xb32 - b * jnp.cos(2.0 * a * xb32) + b).astype(jnp.bfloat16)
    assert outb.dtype == jnp.bfloat16
    assert jnp.allclose(outb.astype(jnp.float32), refb.astype(jnp.float32),
                        atol=1e-2, rtol=1e-2)

    # a == 0 path: identity, returned directly (no pallas_call), matching PyTorch.
    assert jnp.array_equal(snake(x, a=0.0), x)

    print("KERNEL_OK")
</pallas_src>

<mosaic_0001>
module attributes {stable_mosaic.version = 11 : i64} {
  func.func @_snake_kernel(%arg0: i32, %arg1: memref<2xf32, #tpu.memory_space<smem>>, %arg2: memref<8x128xf32, #tpu.memory_space<vmem>>, %arg3: memref<8x128xf32, #tpu.memory_space<vmem>>) attributes {dimension_semantics = [#tpu.dimension_semantics<parallel>], iteration_bounds = array<i64: 2>, scalar_prefetch = 0 : i64, scratch_operands = 0 : i64, tpu.core_type = #tpu.core_type<tc>, window_params = [{transform_indices = @transform_0, window_bounds = array<i64: 2>}, {transform_indices = @transform_1, window_bounds = array<i64: 8, 128>}, {transform_indices = @transform_2, window_bounds = array<i64: 8, 128>}]} {
    %c0 = arith.constant 0 : index
    %0 = memref.load %arg1[%c0] : memref<2xf32, #tpu.memory_space<smem>>
    %c1 = arith.constant 1 : index
    %1 = memref.load %arg1[%c1] : memref<2xf32, #tpu.memory_space<smem>>
    %c0_0 = arith.constant 0 : index
    %c0_1 = arith.constant 0 : index
    %2 = vector.load %arg2[%c0_0, %c0_1] : memref<8x128xf32, #tpu.memory_space<vmem>>, vector<8x128xf32>
    %3 = vector.broadcast %0 : f32 to vector<8x128xf32>
    %4 = arith.mulf %3, %2 : vector<8x128xf32>
    %5 = math.sin %4 : vector<8x128xf32>
    %6 = arith.mulf %5, %5 : vector<8x128xf32>
    %7 = vector.broadcast %1 : f32 to vector<8x128xf32>
    %8 = arith.mulf %7, %6 : vector<8x128xf32>
    %9 = arith.addf %2, %8 : vector<8x128xf32>
    %c0_2 = arith.constant 0 : index
    %c0_3 = arith.constant 0 : index
    %10 = vector.load %arg3[%c0_2, %c0_3] : memref<8x128xf32, #tpu.memory_space<vmem>>, vector<8x128xf32>
    tpu.vector_store %arg3[%c0_2, %c0_3], %9 {strides = array<i32>} : memref<8x128xf32, #tpu.memory_space<vmem>>, vector<8x128xf32>,
    return
  }
  func.func @transform_0(%arg0: i32) -> i32 {
    %c0_i32 = arith.constant 0 : i32
    %c0_i32_0 = arith.constant 0 : i32
    return %c0_i32 : i32
  }
  func.func @transform_1(%arg0: i32) -> (i32, i32) {
    %c0_i32 = arith.constant 0 : i32
    %c0_i32_0 = arith.constant 0 : i32
    return %arg0, %c0_i32 : i32, i32
  }
  func.func @transform_2(%arg0: i32) -> (i32, i32) {
    %c0_i32 = arith.constant 0 : i32
    %c0_i32_0 = arith.constant 0 : i32
    return %arg0, %c0_i32 : i32, i32
  }
}

</mosaic_0001>

<bundles_post_ra>
// kernel: tpu_custom_call.1
= control target key start
LH: loop header
LB: loop body
LE: loop exit
PB: predicated region body
PF: predicated region fallthrough
CT: control target
= control target key end

     0   :  { %7 = vsyncpa [#allocation5], 0  ;;  %s844_s0 = inlined_call_operand.hbm [shape: f32[2], index: 0, kind: input, shape index: {}]   ;;  %s845_s1 = inlined_call_operand.hbm [shape: f32[16,128], index: 1, kind: input, shape index: {}]   ;;  %s846_s2 = inlined_call_operand.hbm [shape: f32[16,128], index: 2, kind: output, shape index: {}]  }
   0x1   :  { %8 = vsyncpa [#allocation3], 0 }
   0x2   :  { %10 = vsyncpa [#allocation3 + $0x1], 0 }
   0x3   :  { %11 = vsyncpa [#allocation4], 0 }
   0x4   :  { %13 = vsyncpa [#allocation4 + $0x1], 0  ;;  %s610_s9 = smov 0   ;;  %s612_s10 = smov 0  }
   0x5   :  { %s614_s11 = smov 0   ;;  %s616_s12 = smov 0  }
   0x6 LB: > { %s631_s13 = sadd.s32 4294967295, %s584_s12   ;;  %s381_s14 = sadd.s32 4294967294, %s584_s12   ;;  %s584_s12 = sphi %s616_s12, %s867_s12   ;;  %s580_s11 = sphi %s614_s11, %s866_s11   ;;  %s576_s10 = sphi %s612_s10, %s865_s10   ;;  %s572_s9 = sphi %s610_s9, %s864_s9  }
   0x7   : > { %p60_p0 = scmp.ne.s32.totalorder %s576_s10, %s572_s9  ;;  %p847_p1 = scmp.eq.s32.totalorder %s631_s13, 0 }
   0x8   : > { %p90_p3 = scmp.eq.s32.totalorder %s381_s14, 1  ;;  %p382_p5 = scmp.ge.s32.totalorder %s584_s12, 1 }
   0x9   : > { %p640_p4 = por %p847_p1, %p60_p0  ;;  %p97_p7 = scmp.lt.s32.totalorder %s584_s12, 3 }
   0xa   : > { %p645_p6 = por %p90_p3, %p60_p0  ;;  %s656_s18 = sadd.s32 1, %s584_s12  }
   0xb   : > { %s850_s15 = scalar_select %p640_p4, 1, 0 }
   0xc   : > { %s851_s16 = scalar_select %p645_p6, 1, 0 }
   0xd   : > { %p650_p8 = pnand %p382_p5, %p97_p7  ;;  %s44_s19 = ssub.s32 %s584_s12, %s656_s18 }
   0xe   : > { %s47_s20 = sadd.s32 1, %s580_s11  ;;  %p669_p12 = scmp.eq.s32.totalorder %s44_s19, 0 }
   0xf   : > { %p412_p10 = pneg %p650_p8  ;;  %p54_p13 = scmp.ne.s32.totalorder %s580_s11, %s576_s10 }
  0x10   : > { %p55_p0 = scmp.eq.s32.totalorder %s584_s12, 0  ;;  %p425_p3 = scmp.lt.s32.totalorder %s584_s12, 2 }
  0x11   : > { %p665_p11 = pnand %p412_p10, %p847_p1  ;;  %s471_s25 = scalar_lea.hbm %s844_s0, 16 }
  0x12   : > { %p472_p5 = scmp.ne.s32.totalorder %s844_s0, %s471_s25  ;;  %p478_p1 = scmp.lt.u32.totalorder %s471_s25, %s844_s0 }
  0x13   : > { %p473_p7 = pneg %p665_p11 }
  0x15   : > { %p474_p10 = pnand %p473_p7, %p472_p5 }
  0x17   : > { %p475_p9 = pneg %p474_p10 }
  0x19   : > { %p480_p2 = pnand %p478_p1, %p475_p9 }
  0x1b   : > { %483 = shalt.err (!%p480_p2)
}
  0x1c   : > { %s586_s30 = smov [#allocation2]   ;;  %p56_p1 = por %p55_p0, %p54_p13 }
  0x1d   : > { %415 = dma.hbm_to_smem (!%p665_p11), %s844_s0, 16, %s586_s30, [#allocation5]  }
  0x1e   : > { %s696_s5 = scalar_select %p669_p12, %s580_s11, %s47_s20  }
  0x1f   : > { %p855_p2 = scmp.eq.s32.totalorder %s631_s13, 1  ;;  %s119_s7 = sand.u32 1, %s580_s11  }
  0x20   : > { %s386_s8 = sshll.u32 %s584_s12, 7  ;;  %s385_s14 = sshll.u32 %s119_s7, 3 }
  0x21   : > { %p708_p9 = por %p855_p2, %p54_p13  ;;  %s717_s23 = scalar_lea.hbm %s845_s1, %s386_s8 }
  0x22   : > { %s123_s20 = scalar_lea.vmem [#allocation6], %s385_s14  ;;  %p721_p11 = pnand %p425_p3, %p56_p1 }
  0x23   : > { %s856_s6 = scalar_select %p708_p9, 1, 0 }
  0x24   : > { %s130_s22 = sshll.u32 %s123_s20, 4  ;;  %s120_s25 = scalar_lea.sflag [#allocation3], %s119_s7  ;;  %s725_s22 = int_to_ptr.vmem [resolvable:$true] %s130_s22 }
  0x25   : > { %s484_s26 = scalar_lea.hbm %s717_s23, 128  ;;  %p486_p13 = pneg %p721_p11 }
  0x26   : > { %p485_p12 = scmp.ne.s32.totalorder %s717_s23, %s484_s26  ;;  %s489_s29 = scalar_lea.hbm %s845_s1, 256 }
  0x27   : > { %p490_p3 = scmp.lt.u32.totalorder %s717_s23, %s845_s1  ;;  %p491_p7 = scmp.lt.u32.totalorder %s489_s29, %s484_s26 }
  0x28   : > { %p487_p0 = pnand %p486_p13, %p485_p12  ;;  %p493_p1 = scmp.lt.u32.totalorder %s484_s26, %s717_s23 }
  0x29   : > { %p492_p10 = por %p491_p7, %p490_p3 }
  0x2a   : > { %p488_p5 = pneg %p487_p0 }
  0x2b   : > { %p494_p2 = por %p493_p1, %p492_p10 }
  0x2d   : > { %p495_p6 = pnand %p494_p2, %p488_p5 }
  0x2f   : > { %498 = shalt.err (!%p495_p6)
}
  0x30   : > { %s499_s4 = scalar_lea.vmem %s725_s22, 128  ;;  %s587_s7 = smov [#allocation6]  }
  0x31   : > { %p500_p12 = scmp.ne.s32.totalorder %s725_s22, %s499_s4  ;;  %s504_s8 = sshll.u32 %s587_s7, 4  ;;  %s505_s8 = int_to_ptr.vmem [resolvable:$false] %s504_s8 }
  0x32   : > { %s506_s14 = scalar_lea.vmem %s505_s8, 256  ;;  %p507_p4 = scmp.lt.s32.totalorder %s725_s22, %s505_s8 }
  0x33   : > { %p502_p0 = pnand %p500_p12, %p486_p13  ;;  %p508_p3 = scmp.lt.s32.totalorder %s506_s14, %s499_s4 }
  0x35   : > { %p503_p9 = pneg %p502_p0  ;;  %p509_p7 = por %p508_p3, %p507_p4 }
  0x37   : > { %p510_p10 = pnand %p509_p7, %p503_p9 }
  0x39   : > { %513 = shalt.err (!%p510_p10)
}
  0x3a   : > { %419 = dma.hbm_to_vmem [thread:$0]  (!%p721_p11), %s717_s23, 128, %s725_s22, %s120_s25  }
  0x3b   : > { %139 = sbr.rel (%p650_p8) target bundleno = 182 (0xb6), region = 28  ;;  %p858_p6 = scmp.eq.s32.totalorder (!%p650_p8), %s631_s13, 0 }
  0x42   : > { %559 = dma.done.wait (%p858_p6), [#allocation5], 16   ;;  %p859_p13 = pmov %p858_p6 }
  0x43   : > { %s759_s19 = sand.u32 1, %s576_s10   ;;  %p860_p4 = scmp.ne.s32.totalorder %s850_s15, 0 }
  0x44   : > { %561 = vsyncadd (%p859_p13), [#allocation5], 4294967280  ;;  %s389_s21 = sshll.u32 %s759_s19, 3  ;;  %s146_s20 = scalar_lea.sflag [#allocation3], %s759_s19 }
  0x45   : > { %s149_s23 = scalar_lea.vmem [#allocation6], %s389_s21 }
  0x46   : > { %563 = dma.done.wait (%p860_p4), %s146_s20, 128  }
  0x47   : > { %565 = vsyncadd (%p860_p4), %s146_s20, 4294967168 }
  0x48   : > { %154 = sfence }
  0x49   : > { %s171_s17 = sld [smem:[#allocation2]]  ;;  %v769_v0 = vld [vmem:[%s149_s23] sm:$0xff]  ;;  %v588_v14 = vmov 683565275   ;;  %v589_v16 = vmov 2475754826  }
  0x4a   : > { %v590_v18 = vmov 2131351028   ;;  %v591_v20 = vmov 2102212464   ;;  %v592_v22 = vmov 920167782  }
  0x4b   : > { %v593_v29 = vmov 1326507024   ;;  %s391_s15 = sld [smem:[#allocation2 + $0x1]]  ;;  %s170_s22 = scalar_lea.vmem [#allocation7], %s389_s21 }
  0x4c   : > { %s299_s24 = sshll.u32 %s170_s22, 4  ;;  %s397_s25 = sshll.u32 %s631_s13, 7  ;;  %s797_s24 = int_to_ptr.vmem [resolvable:$true] %s299_s24 }
  0x4d   : > { %s802_s28 = scalar_lea.hbm %s846_s2, %s397_s25  ;;  %s286_s29 = scalar_lea.sflag [#allocation4], %s759_s19 }
  0x4e   : > { %s514_s30 = scalar_lea.vmem %s797_s24, 128  ;;  %p861_p9 = scmp.ne.s32.totalorder %s856_s6, 0 }
  0x4f   : > { %v174_v1 = vstv %s171_s17  ;;  %p515_p8 = scmp.ne.s32.totalorder %s797_s24, %s514_s30  ;;  %s594_s13 = smov [#allocation7]  }
  0x50   : > { %v772_v2 = vmul.f32 %v174_v1, %v769_v0  ;;  %s518_s3 = sshll.u32 %s594_s13, 4  ;;  %s519_s3 = int_to_ptr.vmem [resolvable:$false] %s518_s3 }
  0x51   : > { %p516_p11 = pnand %p515_p8, %p861_p9  ;;  %s520_s4 = scalar_lea.vmem %s519_s3, 256 }
  0x52   : > { %v179_v3 = vand.u32 2139095040, %v772_v2  ;;  %v176_v5 = vand.u32 2147483647, %v772_v2  ;;  %vm178_vm7 = vcmp.lt.s32.totalorder %v772_v2, 0  ;;  %vm268_vm12 = vweird.f32 %v772_v2  ;;  %p521_p1 = scmp.lt.s32.totalorder %s797_s24, %s519_s3  ;;  %p522_p2 = scmp.lt.s32.totalorder %s520_s4, %s514_s30 }
  0x53   : > { %p517_p5 = pneg %p516_p11 }
  0x54   : > { %v180_v4 = vshrl.u32 %v179_v3, 23  ;;  %v183_v8 = vand.u32 8388607, %v176_v5  ;;  %vm177_vm8 = vcmp.le.f32.partialorder %v176_v5, 0.7853982  ;;  %p523_p12 = por %p522_p2, %p521_p1 }
  0x56   : > { %v392_v6 = vadd.s32 4294967169, %v180_v4  ;;  %v184_v11 = vor.u32 8388608, %v183_v8  ;;  %p524_p0 = pnand %p523_p12, %p517_p5 }
  0x58   : > { %v186_v7 = vadd.s32 1, %v392_v6  ;;  %v224_v31 = vshll.u32 %v184_v11, 8 }
  0x5a   : > { %vm187_vm0 = vcmp.gt.s32.totalorder %v186_v7, 0 }
  0x5b   : > { %v188_v9 = vsel %vm187_vm0, %v186_v7, 0 }
  0x5c   : > { %v190_v10 = vand.u32 31, %v188_v9  ;;  %v189_v12 = vshrl.u32 %v188_v9, 5 }
  0x5e   : > { %v191_v13 = vsub.s32 32, %v190_v10  ;;  %v193_v15 = vshll.u32 %v588_v14, %v190_v10  ;;  %v196_v17 = vshll.u32 %v589_v16, %v190_v10  ;;  %v199_v19 = vshll.u32 %v590_v18, %v190_v10 }
  0x5f   : > { %v202_v21 = vshll.u32 %v591_v20, %v190_v10  ;;  %v205_v23 = vshll.u32 %v592_v22, %v190_v10  ;;  %vm208_vm1 = vcmp.lt.s32.totalorder %v189_v12, 1  ;;  %vm211_vm2 = vcmp.lt.s32.totalorder %v189_v12, 4 }
  0x60   : > { %v192_v24 = vshrl.u32 %v588_v14, %v191_v13  ;;  %v194_v25 = vshrl.u32 %v589_v16, %v191_v13  ;;  %v197_v26 = vshrl.u32 %v590_v18, %v191_v13  ;;  %v200_v27 = vshrl.u32 %v591_v20, %v191_v13 }
  0x61   : > { %v203_v28 = vshrl.u32 %v592_v22, %v191_v13  ;;  %v206_v30 = vshrl.u32 %v593_v29, %v191_v13  ;;  %vm209_vm3 = vcmp.lt.s32.totalorder %v189_v12, 2  ;;  %vm210_vm4 = vcmp.lt.s32.totalorder %v189_v12, 3 }
  0x62   : > { %v195_v32 = vor.u32 %v194_v25, %v193_v15  ;;  %v198_v33 = vor.u32 %v197_v26, %v196_v17  ;;  %v201_v34 = vor.u32 %v200_v27, %v199_v19 }
  0x63   : > { %v204_v35 = vor.u32 %v203_v28, %v202_v21  ;;  %v207_v36 = vor.u32 %v206_v30, %v205_v23 }
  0x64   : > { %v212_v37 = vsel %vm208_vm1, %v192_v24, %v195_v32  ;;  %v213_v38 = vsel %vm211_vm2, %v201_v34, 2102212464  ;;  %v216_v39 = vsel %vm208_vm1, %v195_v32, %v198_v33  ;;  %v220_v40 = vsel %vm208_vm1, %v198_v33, %v201_v34 }
  0x65   : > { %v214_v41 = vsel %vm210_vm4, %v198_v33, %v213_v38  ;;  %v217_v42 = vsel %vm211_vm2, %v204_v35, 920167782  ;;  %v221_v43 = vsel %vm211_vm2, %v207_v36, 1326507024  ;;  %v281_v32 = vstv %s391_s15 }
  0x66   : > { %v218_v44 = vsel %vm210_vm4, %v201_v34, %v217_v42  ;;  %v222_v45 = vsel %vm210_vm4, %v204_v35, %v221_v43  ;;  %v215_v46 = vsel %vm209_vm3, %v212_v37, %v214_v41 }
  0x67   : > { %v219_v47 = vsel %vm209_vm3, %v216_v39, %v218_v44  ;;  %v223_v48 = vsel %vm209_vm3, %v220_v40, %v222_v45  ;;  %v231_v53 = vmul.u32 %v224_v31, %v215_v46 }
  0x68   : > { %v778_v49 = vmul.u32.u64.low %v224_v31, %v223_v48  ;;  %v779_v50 = vmul.u32.u64.high %v224_v31, %v223_v48, %v778_v49  ;;  %v781_v51 = vmul.u32.u64.low %v224_v31, %v219_v47  ;;  %v782_v52 = vmul.u32.u64.high %v224_v31, %v219_v47, %v781_v51 }
  0x6a   : > { %vm233_vm5 = vc.u32 %v779_v50, %v781_v51  ;;  %v234_v54 = vadd.s32 1, %v782_v52  ;;  %v232_v3 = vadd.s32 %v781_v51, %v779_v50 }
  0x6c   : > { %v235_v55 = vsel %vm233_vm5, %v234_v54, %v782_v52 }
  0x6d   : > { %v236_v56 = vadd.s32 %v235_v55, %v231_v53 }
  0x6f   : > { %v237_v57 = vadd.s32 536870912, %v236_v56 }
  0x71   : > { %v238_v58 = vshrl.u32 %v237_v57, 30 }
  0x73   : > { %v239_v59 = vshll.u32 %v238_v58, 30  ;;  %v262_v16 = vsub.s32 4, %v238_v58 }
  0x75   : > { %v240_v60 = vsub.s32 %v236_v56, %v239_v59  ;;  %v263_v19 = vsel %vm178_vm7, %v262_v16, %v238_v58 }
  0x76   : > { %v265_v22 = vsel %vm177_vm8, 0, %v263_v19 }
  0x77   : > { %v242_v61 = vsub.s32 0, %v240_v60  ;;  %v269_v23 = vadd.s32 3, %v265_v22 }
  0x79   : > { %v393_v62 = vmin.u32 %v242_v61, %v240_v60  ;;  %v270_v24 = vand.u32 3, %v269_v23 }
  0x7b   : > { %v244_v63 = vclz %v393_v62  ;;  %vm275_vm9 = vcmp.eq.s32.totalorder %v270_v24, 2  ;;  %vm272_vm10 = vcmp.eq.s32.totalorder %v270_v24, 0  ;;  %vm271_vm11 = vcmp.lt.s32.totalorder %v270_v24, 2 }
  0x7d   : > { %v394_v1 = vadd.s32 4294967294, %v244_v63 }
  0x7f   : > { %vm395_vm6 = vcmp.lt.s32.totalorder %v394_v1, 0 }
  0x80   : > { %v247_v4 = vsel %vm395_vm6, 0, %v394_v1 }
  0x81   : > { %v248_v6 = vsub.s32 32, %v247_v4  ;;  %v249_v7 = vshll.u32 %v240_v60, %v247_v4  ;;  %v252_v8 = vsub.s32 4294967266, %v247_v4 }
  0x83   : > { %v250_v9 = vshrl.u32 %v232_v3, %v248_v6  ;;  %v253_v10 = vadd.s32 127, %v252_v8 }
  0x85   : > { %v251_v11 = vor.u32 %v250_v9, %v249_v7  ;;  %v254_v12 = vshll.u32 %v253_v10, 23 }
  0x87   : > { %v255_v13 = vor.u32 4788187, %v254_v12  ;;  %v258_v14 = vcvt.s32.f32 %v251_v11 }
  0x89   : > { %v256_v15 = vand.u32 2147483647, %v255_v13 }
  0x8b   : > { %v259_v17 = vmul.f32 %v258_v14, %v256_v15 }
  0x8d   : > { %v260_v18 = vxor.u32 2147483648, %v259_v17 }
  0x8f   : > { %v261_v20 = vsel %vm178_vm7, %v260_v18, %v259_v17 }
  0x90   : > { %v264_v21 = vsel %vm177_vm8, %v772_v2, %v261_v20 }
  0x91   : > { %467 = vcosq.f32 %v264_v21 }
  0x92   : > { %469 = vsinq.f32 %v264_v21 }
  0x9b   : > { %v468_v25 = vpop.eup %467 }
  0x9c   : > { %v470_v26 = vpop.eup %469  ;;  %v276_v27 = vxor.u32 2147483648, %v468_v25 }
  0x9d   : > { %v273_v5 = vxor.u32 2147483648, %v470_v26 }
  0x9e   : > { %v277_v28 = vsel %vm275_vm9, %v276_v27, %v470_v26 }
  0x9f   : > { %v274_v29 = vsel %vm272_vm10, %v468_v25, %v273_v5 }
  0xa0   : > { %v278_v30 = vsel %vm271_vm11, %v274_v29, %v277_v28 }
  0xa1   : > { %v279_v31 = vsel %vm268_vm12, nan, %v278_v30 }
  0xa2   : > { %v280_v33 = vmul.f32 %v279_v31, %v279_v31 }
  0xa4   : > { %v282_v34 = vmul.f32 %v281_v32, %v280_v33 }
  0xa6   : > { %v283_v35 = vadd.f32 %v282_v34, %v769_v0 }
  0xa8   : > { %284 = vst [vmem:[%s170_s22] sm:$0xff] %v283_v35 }
  0xa9   : > { %527 = shalt.err (!%p524_p0)
}
  0xaa   : > { %s528_s7 = scalar_lea.hbm %s802_s28, 128  ;;  %s532_s19 = scalar_lea.hbm %s846_s2, 256 }
  0xab   : > { %p529_p3 = scmp.ne.s32.totalorder %s802_s28, %s528_s7  ;;  %p533_p6 = scmp.lt.u32.totalorder %s802_s28, %s846_s2 }
  0xac   : > { %p534_p13 = scmp.lt.u32.totalorder %s532_s19, %s528_s7  ;;  %p536_p8 = scmp.lt.u32.totalorder %s528_s7, %s802_s28 }
  0xad   : > { %p530_p7 = pnand %p529_p3, %p861_p9 }
  0xae   : > { %p535_p4 = por %p534_p13, %p533_p6 }
  0xaf   : > { %p531_p10 = pneg %p530_p7 }
  0xb0   : > { %p537_p11 = por %p536_p8, %p535_p4 }
  0xb2   : > { %p538_p5 = pnand %p537_p11, %p531_p10 }
  0xb4   : > { %541 = shalt.err (!%p538_p5)
}
  0xb5   : > { %410 = dma.vmem_to_hbm [thread:$0]  (%p861_p9), %s797_s24, 128, %s802_s28, %s286_s29  }
  0xb6 PF: > { %s311_s23 = sand.u32 1, %s572_s9   ;;  %p862_p1 = scmp.ne.s32.totalorder %s851_s16, 0 }
  0xb7   : > { %p863_p2 = scmp.ge.s32.totalorder %s584_s12, 2  ;;  %s312_s17 = scalar_lea.sflag [#allocation4], %s311_s23 }
  0xb9   : > { %p421_p12 = pnand %p863_p2, %p862_p1 }
  0xbb   : > { %567 = dma.done.wait (!%p421_p12), %s312_s17, 128  }
  0xbc   : > { %569 = vsyncadd (!%p421_p12), %s312_s17, 4294967168  ;;  %p16_p0 = scmp.ge.s32.totalorder %s656_s18, 4   ;;  %s864_s9 = smov %s576_s10 }
  0xbd   : > { %s865_s10 = smov %s580_s11  ;;  %s866_s11 = smov %s696_s5 }
  0xbe   : > { %s867_s12 = smov %s656_s18  ;;  %18 = sbr.rel (!%p16_p0) target bundleno = 6 (0x6), region = 78 }
  0xc5   :  { %317 = vsyncpa [#allocation3], 1 }
  0xc6   :  { %319 = vsyncpa [#allocation3 + $0x1], 1 }
  0xc7   :  { %320 = vsyncpa [#allocation4], 1 }
  0xc8   :  { %322 = vsyncpa [#allocation4 + $0x1], 1 }
  0xc9   :  { %323 = vsyncpa [#allocation5], 1 }
  0xca   :  { %325 = vsyncpa [#allocation5 + $0x1], 1 }

</bundles_post_ra>
